<compile_context>
chip_gen: v7x
topology: tpu7x:2x2x1
jax: 0.10.0
libtpu: 0.0.40
codegen_flags: <defaults>
</compile_context>

<pallas_src>
import functools

import jax
import jax.numpy as jnp
from jax.experimental import pallas as pl
from jax.experimental.pallas import tpu as pltpu


def _round_up(x, m):
    return ((x + m - 1) // m) * m


# ---------------------------------------------------------------------------
# VMEM budget (per-generation): ~80% of physical VMEM per TensorCore.
# v5e/v6e: 128 MiB -> ~102 MiB;  v7x: 64 MiB -> ~51 MiB.  Fallback assumes the
# smallest (v7x) so the plan is safe on every generation.
# ---------------------------------------------------------------------------
_VMEM_BUDGET_CACHE = None


def _vmem_budget():
    global _VMEM_BUDGET_CACHE
    if _VMEM_BUDGET_CACHE is None:
        try:
            phys = int(pltpu.get_tpu_info().vmem_capacity_bytes)
        except Exception:
            phys = 64 << 20  # conservative: v7x per-TC VMEM
        _VMEM_BUDGET_CACHE = int(phys * 0.80)
    return _VMEM_BUDGET_CACHE


# ---------------------------------------------------------------------------
# Tile planning.
# ---------------------------------------------------------------------------
def _plan_hidden(in_dim, h_dim, out_dim, tile_h, compute_itemsize=2):
    """Pick the hidden block size th (and padded dims). th == h_p => VMEM-resident weights."""
    in_p = _round_up(in_dim, 128)
    out_p = _round_up(out_dim, 128)
    h_full = _round_up(h_dim, 128)
    budget = _vmem_budget()

    # Resident weights: both (double-buffered) weight blocks held in VMEM for the whole call.
    if 2 * compute_itemsize * (in_p * h_full + h_full * out_p) <= budget // 2:
        th = h_full
    else:
        th = min(max(256, _round_up(tile_h, 256)), h_full)
        # Shrink until the double-buffered streamed weight blocks take <= ~half the budget.
        while th > 128 and 2 * compute_itemsize * (in_p * th + th * out_p) > budget // 2:
            th = max(128, th // 2)
        th = max(128, (th // 128) * 128)
    h_p = _round_up(h_dim, th)
    return in_p, h_p, out_p, th


def _plan_rows(M, in_p, th, out_p, out_itemsize, tile_m, compute_itemsize=2):
    """Pick the row tile tm: as large as the VMEM budget allows, >=2 tiles for megacore."""
    budget = _vmem_budget()
    # Weight + bias VMEM (double-buffered; (1, th) bias tiles pad to 8 sublanes).
    w_vmem = 2 * compute_itemsize * (in_p * th + th * out_p)
    w_vmem += 2 * 4 * 8 * (th + out_p)
    avail = budget - w_vmem
    # Per row of tm: x (2 bufs, bf16) + output (2 bufs) + f32 accumulator.
    per_row = 2 * compute_itemsize * in_p + 2 * out_itemsize * out_p + 4 * out_p
    tm_cap = max(16, (avail // per_row) // 16 * 16) if avail > per_row * 16 else 16
    tm = min(tile_m, tm_cap)
    # Megacore (v7x): prefer at least two row tiles so both TensorCores get work.
    tm = min(tm, max(16, _round_up((M + 1) // 2, 16)))
    tm = max(16, (tm // 16) * 16)
    M_p = _round_up(M, tm)
    return tm, M_p


# ---------------------------------------------------------------------------
# Kernel: fused fc1 -> ReLU -> fc2 with an f32 accumulator over the hidden axis.
# ---------------------------------------------------------------------------
def _mlp_kernel(x_ref, w1_ref, b1_ref, w2_ref, b2_ref, o_ref, acc_ref):
    # x_ref:  (tm, in_p)    bf16      w1_ref: (in_p, th)  bf16     b1_ref: (1, th)   f32
    # w2_ref: (th, out_p)   bf16      b2_ref: (1, out_p)  f32
    # o_ref:  (tm, out_p)   out dtype acc_ref:(tm, out_p) f32 (lives across hidden axis)
    h_idx = pl.program_id(1)

    @pl.when(h_idx == 0)
    def _():
        # Initialise the accumulator with b2 -> no bias add in the finalize epilogue.
        acc_ref[...] = jnp.broadcast_to(b2_ref[...], acc_ref.shape)

    # fc1 chunk on the MXU (bf16 in, f32 accumulate); bias + ReLU stay f32 on the VPU.
    h = jnp.dot(x_ref[...], w1_ref[...], preferred_element_type=jnp.float32)
    h = jnp.maximum(h + b1_ref[...], 0.0)
    # dropout(p=0.0) is the identity -> no-op.

    # fc2 chunk, accumulated in f32.
    acc_ref[...] += jnp.dot(h.astype(w2_ref.dtype), w2_ref[...],
                            preferred_element_type=jnp.float32)

    @pl.when(h_idx == pl.num_programs(1) - 1)
    def _():
        o_ref[...] = acc_ref[...].astype(o_ref.dtype)


# ---------------------------------------------------------------------------
# One-time weight preparation (pad + cast), kept OUT of the per-call hot path.
# ---------------------------------------------------------------------------
def prepare_mlp_params(w1, b1, w2, b2, *, tile_h=1024, compute_dtype=jnp.bfloat16):
    """Pads/casts parameters once. Returns ((w1_p, b1_p, w2_p, b2_p), block_h)."""
    in_dim, h_dim = w1.shape
    out_dim = w2.shape[1]
    c_itemsize = jnp.dtype(compute_dtype).itemsize
    in_p, h_p, out_p, th = _plan_hidden(in_dim, h_dim, out_dim, tile_h, c_itemsize)

    def pad2(a, shape, dtype):
        a = a.astype(dtype)
        if a.shape == shape:          # skip the copy entirely when already aligned
            return a
        return jnp.zeros(shape, dtype).at[:a.shape[0], :a.shape[1]].set(a)

    # Zero padding is numerically inert: padded b1 entries are 0, relu(0)=0 contributes
    # nothing through the (zero) padded W2 rows; padded output columns are sliced off.
    w1_p = pad2(w1, (in_p, h_p), compute_dtype)
    b1_p = pad2(b1.reshape(1, -1), (1, h_p), jnp.float32)
    w2_p = pad2(w2, (h_p, out_p), compute_dtype)
    b2_p = pad2(b2.reshape(1, -1), (1, out_p), jnp.float32)
    return (w1_p, b1_p, w2_p, b2_p), th


# ---------------------------------------------------------------------------
# Jitted forward taking pre-padded weights.
# ---------------------------------------------------------------------------
@functools.partial(jax.jit,
                   static_argnames=("out_dim", "block_h", "tile_m", "compute_dtype"))
def mlp_forward(x, w1_p, b1_p, w2_p, b2_p, *, out_dim, block_h,
                tile_m=512, compute_dtype=jnp.bfloat16):
    """x: (..., in_dim) -> (..., out_dim), using pre-padded weights from prepare_mlp_params."""
    *lead, in_dim = x.shape
    M = 1
    for d in lead:
        M *= d

    in_p, h_p = w1_p.shape
    out_p = w2_p.shape[1]
    th = block_h
    assert h_p % th == 0 and in_p % 128 == 0 and out_p % 128 == 0 and th % 128 == 0

    out_dtype = x.dtype
    out_itemsize = jnp.dtype(out_dtype).itemsize
    c_itemsize = jnp.dtype(compute_dtype).itemsize

    tm, M_p = _plan_rows(M, in_p, th, out_p, out_itemsize, tile_m, c_itemsize)

    xm = x.reshape(M, in_dim).astype(compute_dtype)
    if (M_p, in_p) != (M, in_dim):
        xm = jnp.zeros((M_p, in_p), compute_dtype).at[:M, :in_dim].set(xm)

    m_tiles = M_p // tm
    h_tiles = h_p // th
    grid = (m_tiles, h_tiles)

    # Accurate cost hint: weights are streamed once per M tile when the hidden axis is
    # tiled, exactly once when resident (constant block index => single DMA).
    flops = 2 * M_p * (in_p * h_p + h_p * out_p)
    w_bytes = c_itemsize * (in_p * h_p + h_p * out_p)
    w_reads = m_tiles if h_tiles > 1 else 1
    bytes_accessed = (M_p * in_p * c_itemsize
                      + w_bytes * w_reads
                      + 4 * (h_p * w_reads + out_p)
                      + M_p * out_p * out_itemsize)

    out = pl.pallas_call(
        _mlp_kernel,
        out_shape=jax.ShapeDtypeStruct((M_p, out_p), out_dtype),
        grid_spec=pltpu.PrefetchScalarGridSpec(
            num_scalar_prefetch=0,
            grid=grid,
            in_specs=[
                pl.BlockSpec((tm, in_p), lambda i, j: (i, 0)),     # x row tile
                pl.BlockSpec((in_p, th), lambda i, j: (0, j)),     # W1 column block
                pl.BlockSpec((1, th), lambda i, j: (0, j)),        # b1 chunk
                pl.BlockSpec((th, out_p), lambda i, j: (j, 0)),    # W2 row block
                pl.BlockSpec((1, out_p), lambda i, j: (0, 0)),     # b2
            ],
            out_specs=pl.BlockSpec((tm, out_p), lambda i, j: (i, 0)),
            scratch_shapes=[pltpu.VMEM((tm, out_p), jnp.float32)],
        ),
        compiler_params=pltpu.CompilerParams(
            dimension_semantics=("parallel", "arbitrary"),
            vmem_limit_bytes=_vmem_budget(),
        ),
        cost_estimate=pl.CostEstimate(flops=flops, transcendentals=0,
                                      bytes_accessed=bytes_accessed),
    )(xm, w1_p, b1_p, w2_p, b2_p)

    if (M_p, out_p) != (M, out_dim):
        out = out[:M, :out_dim]
    return out.reshape(*lead, out_dim)


def mlp_transformer(x, w1, b1, w2, b2, *, tile_m=512, tile_h=1024,
                    compute_dtype=jnp.bfloat16):
    """One-shot convenience wrapper.  For repeated calls, run prepare_mlp_params once and
    call mlp_forward with the padded weights (keeps the pad/cast out of the hot path)."""
    params, block_h = prepare_mlp_params(w1, b1, w2, b2, tile_h=tile_h,
                                         compute_dtype=compute_dtype)
    return mlp_forward(x, *params, out_dim=w2.shape[1], block_h=block_h,
                       tile_m=tile_m, compute_dtype=compute_dtype)


def init_params(key, in_dim, h_dim, out_dim, dtype=jnp.float32):
    # Deterministic init mimicking nn.Linear defaults: U(-1/sqrt(fan_in), 1/sqrt(fan_in)).
    k1, k2, k3, k4 = jax.random.split(key, 4)
    lim1 = 1.0 / (in_dim ** 0.5)
    lim2 = 1.0 / (h_dim ** 0.5)
    w1 = jax.random.uniform(k1, (in_dim, h_dim), dtype, minval=-lim1, maxval=lim1)
    b1 = jax.random.uniform(k2, (h_dim,), dtype, minval=-lim1, maxval=lim1)
    w2 = jax.random.uniform(k3, (h_dim, out_dim), dtype, minval=-lim2, maxval=lim2)
    b2 = jax.random.uniform(k4, (out_dim,), dtype, minval=-lim2, maxval=lim2)
    return w1, b1, w2, b2


if __name__ == "__main__":
    key = jax.random.PRNGKey(0)
    B, S, in_dim, h_dim = 2, 8, 32, 128
    out_dim = in_dim  # out_d=None -> out_d = in_dim

    kx, kp = jax.random.split(key)
    x = jax.random.normal(kx, (B, S, in_dim), jnp.float32)
    w1, b1, w2, b2 = init_params(kp, in_dim, h_dim, out_dim)

    # Pad / cast weights once (outside the hot path), then run the fused kernel.
    params, block_h = prepare_mlp_params(w1, b1, w2, b2)
    y = mlp_forward(x, *params, out_dim=out_dim, block_h=block_h)
    y = jax.block_until_ready(y)
    assert y.shape == (B, S, out_dim)

    # Reference with the same bf16-matmul / f32-accumulate recipe as the kernel.
    xb = x.reshape(-1, in_dim).astype(jnp.bfloat16)
    h = jnp.dot(xb, w1.astype(jnp.bfloat16), preferred_element_type=jnp.float32) + b1
    h = jnp.maximum(h, 0.0)
    ref = jnp.dot(h.astype(jnp.bfloat16), w2.astype(jnp.bfloat16),
                  preferred_element_type=jnp.float32) + b2
    ref = ref.reshape(B, S, out_dim)
    assert jnp.allclose(y.astype(jnp.float32), ref, atol=2e-2, rtol=2e-2), \
        "mismatch vs bf16-recipe reference"

    # Sanity check against pure-f32 math (looser tolerance due to bf16 rounding).
    ref_f32 = jnp.maximum(x @ w1 + b1, 0.0) @ w2 + b2
    assert jnp.allclose(y.astype(jnp.float32), ref_f32, atol=5e-2, rtol=5e-2), \
        "mismatch vs f32 reference"

    print("KERNEL_OK")
</pallas_src>

<mosaic_0001>
module attributes {stable_mosaic.version = 11 : i64} {
  func.func @_mlp_kernel(%arg0: i32, %arg1: i32, %arg2: memref<16x128xbf16, #tpu.memory_space<vmem>>, %arg3: memref<128x128xbf16, #tpu.memory_space<vmem>>, %arg4: memref<1x128xf32, #tpu.memory_space<vmem>>, %arg5: memref<128x128xbf16, #tpu.memory_space<vmem>>, %arg6: memref<1x128xf32, #tpu.memory_space<vmem>>, %arg7: memref<16x128xf32, #tpu.memory_space<vmem>>, %arg8: memref<16x128xf32, #tpu.memory_space<vmem>>) attributes {dimension_semantics = [#tpu.dimension_semantics<parallel>, #tpu.dimension_semantics<arbitrary>], iteration_bounds = array<i64: 1, 1>, scalar_prefetch = 0 : i64, scratch_operands = 1 : i64, tpu.core_type = #tpu.core_type<tc>, window_params = [{transform_indices = @transform_0, window_bounds = array<i64: 16, 128>}, {transform_indices = @transform_1, window_bounds = array<i64: 128, 128>}, {transform_indices = @transform_2, window_bounds = array<i64: 1, 128>}, {transform_indices = @transform_3, window_bounds = array<i64: 128, 128>}, {pipeline_mode = #tpu.pipeline_mode<synchronous>, transform_indices = @transform_4, window_bounds = array<i64: 1, 128>}, {transform_indices = @transform_5, window_bounds = array<i64: 16, 128>}]} {
    %c0_i32 = arith.constant 0 : i32
    %0 = arith.cmpi eq, %arg1, %c0_i32 : i32
    %1 = arith.extui %0 : i1 to i32
    %c0_i32_0 = arith.constant 0 : i32
    %2 = arith.cmpi ne, %1, %c0_i32_0 : i32
    scf.if %2 {
      %c0_16 = arith.constant 0 : index
      %c0_17 = arith.constant 0 : index
      %20 = vector.load %arg6[%c0_16, %c0_17] : memref<1x128xf32, #tpu.memory_space<vmem>>, vector<1x128xf32>
      %21 = vector.shape_cast %20 : vector<1x128xf32> to vector<1x128xf32>
      %22 = vector.broadcast %21 : vector<1x128xf32> to vector<16x128xf32>
      %c0_18 = arith.constant 0 : index
      %c0_19 = arith.constant 0 : index
      %23 = vector.load %arg8[%c0_18, %c0_19] : memref<16x128xf32, #tpu.memory_space<vmem>>, vector<16x128xf32>
      tpu.vector_store %arg8[%c0_18, %c0_19], %22 {strides = array<i32>} : memref<16x128xf32, #tpu.memory_space<vmem>>, vector<16x128xf32>,
    } else {
    }
    %c0 = arith.constant 0 : index
    %c0_1 = arith.constant 0 : index
    %3 = vector.load %arg2[%c0, %c0_1] : memref<16x128xbf16, #tpu.memory_space<vmem>>, vector<16x128xbf16>
    %c0_2 = arith.constant 0 : index
    %c0_3 = arith.constant 0 : index
    %4 = vector.load %arg3[%c0_2, %c0_3] : memref<128x128xbf16, #tpu.memory_space<vmem>>, vector<128x128xbf16>
    %cst = arith.constant dense<0.000000e+00> : vector<16x128xf32>
    %5 = tpu.matmul %3, %4, %cst {dimension_numbers = #tpu.dot_dimension_numbers<[1], [0], [0], [1], [0, 0, 1, 1], [], []>} : vector<16x128xbf16>, vector<128x128xbf16>, vector<16x128xf32> -> vector<16x128xf32>
    %c0_4 = arith.constant 0 : index
    %c0_5 = arith.constant 0 : index
    %6 = vector.load %arg4[%c0_4, %c0_5] : memref<1x128xf32, #tpu.memory_space<vmem>>, vector<1x128xf32>
    %7 = vector.broadcast %6 : vector<1x128xf32> to vector<16x128xf32>
    %8 = arith.addf %5, %7 : vector<16x128xf32>
    %cst_6 = arith.constant 0.000000e+00 : f32
    %9 = vector.broadcast %cst_6 : f32 to vector<16x128xf32>
    %10 = arith.maximumf %8, %9 : vector<16x128xf32>
    %c0_7 = arith.constant 0 : index
    %c0_8 = arith.constant 0 : index
    %11 = vector.load %arg8[%c0_7, %c0_8] : memref<16x128xf32, #tpu.memory_space<vmem>>, vector<16x128xf32>
    %12 = arith.truncf %10 : vector<16x128xf32> to vector<16x128xbf16>
    %c0_9 = arith.constant 0 : index
    %c0_10 = arith.constant 0 : index
    %13 = vector.load %arg5[%c0_9, %c0_10] : memref<128x128xbf16, #tpu.memory_space<vmem>>, vector<128x128xbf16>
    %cst_11 = arith.constant dense<0.000000e+00> : vector<16x128xf32>
    %14 = tpu.matmul %12, %13, %cst_11 {dimension_numbers = #tpu.dot_dimension_numbers<[1], [0], [0], [1], [0, 0, 1, 1], [], []>} : vector<16x128xbf16>, vector<128x128xbf16>, vector<16x128xf32> -> vector<16x128xf32>
    %15 = arith.addf %11, %14 : vector<16x128xf32>
    %c0_12 = arith.constant 0 : index
    %c0_13 = arith.constant 0 : index
    %16 = vector.load %arg8[%c0_12, %c0_13] : memref<16x128xf32, #tpu.memory_space<vmem>>, vector<16x128xf32>
    tpu.vector_store %arg8[%c0_12, %c0_13], %15 {strides = array<i32>} : memref<16x128xf32, #tpu.memory_space<vmem>>, vector<16x128xf32>,
    %c0_i32_14 = arith.constant 0 : i32
    %17 = arith.cmpi eq, %arg1, %c0_i32_14 : i32
    %18 = arith.extui %17 : i1 to i32
    %c0_i32_15 = arith.constant 0 : i32
    %19 = arith.cmpi ne, %18, %c0_i32_15 : i32
    scf.if %19 {
      %c0_16 = arith.constant 0 : index
      %c0_17 = arith.constant 0 : index
      %20 = vector.load %arg8[%c0_16, %c0_17] : memref<16x128xf32, #tpu.memory_space<vmem>>, vector<16x128xf32>
      %c0_18 = arith.constant 0 : index
      %c0_19 = arith.constant 0 : index
      %21 = vector.load %arg7[%c0_18, %c0_19] : memref<16x128xf32, #tpu.memory_space<vmem>>, vector<16x128xf32>
      tpu.vector_store %arg7[%c0_18, %c0_19], %20 {strides = array<i32>} : memref<16x128xf32, #tpu.memory_space<vmem>>, vector<16x128xf32>,
    } else {
    }
    return
  }
  func.func @transform_0(%arg0: i32, %arg1: i32) -> (i32, i32) {
    %c0_i32 = arith.constant 0 : i32
    %c0_i32_0 = arith.constant 0 : i32
    return %arg0, %c0_i32 : i32, i32
  }
  func.func @transform_1(%arg0: i32, %arg1: i32) -> (i32, i32) {
    %c0_i32 = arith.constant 0 : i32
    %c0_i32_0 = arith.constant 0 : i32
    return %c0_i32, %arg1 : i32, i32
  }
  func.func @transform_2(%arg0: i32, %arg1: i32) -> (i32, i32) {
    %c0_i32 = arith.constant 0 : i32
    %c0_i32_0 = arith.constant 0 : i32
    return %c0_i32, %arg1 : i32, i32
  }
  func.func @transform_3(%arg0: i32, %arg1: i32) -> (i32, i32) {
    %c0_i32 = arith.constant 0 : i32
    %c0_i32_0 = arith.constant 0 : i32
    return %arg1, %c0_i32 : i32, i32
  }
  func.func @transform_4(%arg0: i32, %arg1: i32) -> (i32, i32) {
    %c0_i32 = arith.constant 0 : i32
    %c0_i32_0 = arith.constant 0 : i32
    %c0_i32_1 = arith.constant 0 : i32
    return %c0_i32, %c0_i32_0 : i32, i32
  }
  func.func @transform_5(%arg0: i32, %arg1: i32) -> (i32, i32) {
    %c0_i32 = arith.constant 0 : i32
    %c0_i32_0 = arith.constant 0 : i32
    return %arg0, %c0_i32 : i32, i32
  }
}

</mosaic_0001>

<bundles_post_ra>
// kernel: mlp_forward.1
= control target key start
LH: loop header
LB: loop body
LE: loop exit
PB: predicated region body
PF: predicated region fallthrough
CT: control target
= control target key end

     0   :  { %10 = vsyncpa [#allocation4], 0  ;;  %s532_s0 = inlined_call_operand.vmem [shape: bf16[16,128], index: 0, kind: input, shape index: {}]   ;;  %s533_s1 = inlined_call_operand.hbm [shape: bf16[128,128], index: 1, kind: input, shape index: {}]   ;;  %s534_s2 = inlined_call_operand.vmem [shape: f32[1,128], index: 2, kind: input, shape index: {}]   ;;  %s535_s3 = inlined_call_operand.hbm [shape: bf16[128,128], index: 3, kind: input, shape index: {}]   ;;  %s536_s4 = inlined_call_operand.vmem [shape: f32[1,128], index: 4, kind: input, shape index: {}]   ;;  %s537_s5 = inlined_call_operand.vmem [shape: f32[16,128], index: 5, kind: output, shape index: {}]  }
   0x1   :  { %11 = vsyncpa [#allocation6], 0  ;;  %s457_s18 = smov [#allocation3]   ;;  %s409_s22 = scalar_lea.hbm %s533_s1, 1024 }
   0x2   :  { %s19_s19 = sshll.u32 %s457_s18, 4  ;;  %p410_p0 = scmp.ne.s32.totalorder %s533_s1, %s409_s22  ;;  %s20_s19 = int_to_ptr.vmem [resolvable:$true] %s19_s19 }
   0x3   :  { %p413_p1 = scmp.lt.u32.totalorder %s409_s22, %s533_s1 }
   0x5   :  { %p415_p2 = pnand %p413_p1, %p410_p0 }
   0x7   :  { %418 = shalt.err (!%p415_p2)
}
   0x8   :  { %s419_s27 = scalar_lea.vmem %s20_s19, 1024  ;;  %p424_p4 = scmp.lt.s32.totalorder %s20_s19, %s20_s19 }
   0x9   :  { %p420_p3 = scmp.ne.s32.totalorder %s20_s19, %s419_s27  ;;  %p425_p5 = scmp.lt.s32.totalorder %s419_s27, %s419_s27 }
   0xb   :  { %p426_p6 = por %p425_p5, %p424_p4 }
   0xd   :  { %p427_p7 = pnand %p426_p6, %p420_p3 }
   0xf   :  { %430 = shalt.err (!%p427_p7)
}
  0x10   :  { %s458_s28 = smov 64   ;;  %s459_s29 = smov 4  }
  0x11   :  { %25 = dma.hbm_to_vmem [thread:$0]  %s533_s1, 1024, %s20_s19, [#allocation4], %s458_s28, %s458_s28, %s459_s29  }
  0x12   :  { %s460_s7 = smov [#allocation5]   ;;  %s431_s11 = scalar_lea.hbm %s535_s3, 1024 }
  0x13   :  { %s33_s8 = sshll.u32 %s460_s7, 4  ;;  %p432_p8 = scmp.ne.s32.totalorder %s535_s3, %s431_s11  ;;  %s34_s8 = int_to_ptr.vmem [resolvable:$true] %s33_s8 }
  0x14   :  { %p435_p9 = scmp.lt.u32.totalorder %s431_s11, %s535_s3 }
  0x16   :  { %p437_p10 = pnand %p435_p9, %p432_p8 }
  0x18   :  { %440 = shalt.err (!%p437_p10)
}
  0x19   :  { %s441_s16 = scalar_lea.vmem %s34_s8, 1024  ;;  %p446_p12 = scmp.lt.s32.totalorder %s34_s8, %s34_s8 }
  0x1a   :  { %p442_p11 = scmp.ne.s32.totalorder %s34_s8, %s441_s16  ;;  %p447_p13 = scmp.lt.s32.totalorder %s441_s16, %s441_s16 }
  0x1c   :  { %p448_p0 = por %p447_p13, %p446_p12 }
  0x1e   :  { %p449_p1 = pnand %p448_p0, %p442_p11 }
  0x20   :  { %452 = shalt.err (!%p449_p1)
}
  0x21   :  { %39 = dma.hbm_to_vmem [thread:$0]  %s535_s3, 1024, %s34_s8, [#allocation6], %s458_s28, %s458_s28, %s459_s29  }
  0x22   :  { %453 = dma.done.wait [#allocation4], 1024  }
  0x23   :  { %454 = vsyncadd [#allocation4], 4294966272 }
  0x24   :  { %455 = dma.done.wait [#allocation6], 1024  }
  0x25   :  { %456 = vsyncadd [#allocation6], 4294966272  ;;  %v461_v0 = vmov 0.0   ;;  %vm462_vm0 = vmmov 0   ;;  %v392_v1 = vld [vmem:[#allocation3] sm:$0xff]   ;;  %v393_v2 = vld [vmem:[#allocation3 + $0x8] sm:$0xff]  }
  0x26   :  { %346 = vmatprep.subr.bf16.mxu0 %v461_v0  ;;  %362 = vmatprep.mubr.msk.bf16.mxu0 %vm462_vm0, %v461_v0  ;;  %v394_v3 = vld [vmem:[#allocation3 + $0x10] sm:$0xff]   ;;  %v401_v4 = vld [vmem:[#allocation5] sm:$0xff]   ;;  %v395_v5 = vld [vmem:[#allocation3 + $0x18] sm:$0xff]  }
  0x27   :  { %366 = vmatprep.subr.bf16.mxu1 %v461_v0  ;;  %382 = vmatprep.mubr.msk.bf16.mxu1 %vm462_vm0, %v461_v0  ;;  %v402_v6 = vld [vmem:[#allocation5 + $0x8] sm:$0xff]   ;;  %v396_v7 = vld [vmem:[#allocation3 + $0x20] sm:$0xff]   ;;  %v403_v8 = vld [vmem:[#allocation5 + $0x10] sm:$0xff]  }
  0x28   :  { %347 = vmatpush3.bf16.msra.mxu0 %v392_v1  ;;  %367 = vmatpush3.bf16.msra.mxu1 %v401_v4  ;;  %v397_v9 = vld [vmem:[#allocation3 + $0x28] sm:$0xff]   ;;  %v404_v10 = vld [vmem:[#allocation5 + $0x18] sm:$0xff]   ;;  %v398_v11 = vld [vmem:[#allocation3 + $0x30] sm:$0xff]  }
  0x29   :  { %348 = vmatprep.subr.bf16.mxu0 %v461_v0  ;;  %368 = vmatprep.subr.bf16.mxu1 %v461_v0  ;;  %v405_v12 = vld [vmem:[#allocation5 + $0x20] sm:$0xff]   ;;  %v399_v13 = vld [vmem:[#allocation3 + $0x38] sm:$0xff]   ;;  %v406_v14 = vld [vmem:[#allocation5 + $0x28] sm:$0xff]  }
  0x2a   :  { %v400_v15 = vld [vmem:[%s532_s0] sm:$0xff]   ;;  %v407_v16 = vld [vmem:[#allocation5 + $0x30] sm:$0xff]   ;;  %v408_v17 = vld [vmem:[#allocation5 + $0x38] sm:$0xff]  }
  0x2b   :  { %v310_v18 = vld [vmem:[%s534_s2] ss:$0 sm:$0xff] }
  0x2c   :  { %349 = vmatpush3.bf16.msra.mxu0 %v393_v2  ;;  %369 = vmatpush3.bf16.msra.mxu1 %v402_v6  ;;  %v309_v28 = vld [vmem:[%s536_s4] ss:$0 sm:$0xff] }
  0x2d   :  { %350 = vmatprep.subr.bf16.mxu0 %v461_v0  ;;  %370 = vmatprep.subr.bf16.mxu1 %v461_v0 }
  0x30   :  { %351 = vmatpush3.bf16.msra.mxu0 %v394_v3  ;;  %371 = vmatpush3.bf16.msra.mxu1 %v403_v8 }
  0x31   :  { %352 = vmatprep.subr.bf16.mxu0 %v461_v0  ;;  %372 = vmatprep.subr.bf16.mxu1 %v461_v0 }
  0x34   :  { %353 = vmatpush3.bf16.msra.mxu0 %v395_v5  ;;  %373 = vmatpush3.bf16.msra.mxu1 %v404_v10 }
  0x35   :  { %354 = vmatprep.subr.bf16.mxu0 %v461_v0  ;;  %374 = vmatprep.subr.bf16.mxu1 %v461_v0 }
  0x38   :  { %355 = vmatpush3.bf16.msra.mxu0 %v396_v7  ;;  %375 = vmatpush3.bf16.msra.mxu1 %v405_v12 }
  0x39   :  { %356 = vmatprep.subr.bf16.mxu0 %v461_v0  ;;  %376 = vmatprep.subr.bf16.mxu1 %v461_v0 }
  0x3c   :  { %357 = vmatpush3.bf16.msra.mxu0 %v397_v9  ;;  %377 = vmatpush3.bf16.msra.mxu1 %v406_v14 }
  0x3d   :  { %358 = vmatprep.subr.bf16.mxu0 %v461_v0  ;;  %378 = vmatprep.subr.bf16.mxu1 %v461_v0 }
  0x40   :  { %359 = vmatpush3.bf16.msra.mxu0 %v398_v11  ;;  %379 = vmatpush3.bf16.msra.mxu1 %v407_v16 }
  0x41   :  { %360 = vmatprep.subr.bf16.mxu0 %v461_v0  ;;  %380 = vmatprep.subr.bf16.mxu1 %v461_v0 }
  0x44   :  { %361 = vmatpush3.bf16.msra.mxu0 %v399_v13  ;;  %381 = vmatpush3.bf16.msra.mxu1 %v408_v17 }
  0x47   :  { %363 = vmatmul.mubr.bf16.vlgmr.msra.gmra.mrb[0].mxu0 %v400_v15 }
 0x11a   :  { %v175_v19 = vpop.f32.mrb[0].mxu0 }
 0x11b   :  { %v176_v20 = vadd.f32 %v310_v18, %v175_v19  ;;  %v364_v21 = vpop.f32.mrb[1].mxu0 }
 0x11c   :  { %v178_v22 = vpop.f32.mrb[2].mxu0 }
 0x11d   :  { %v179_v23 = vadd.f32 %v310_v18, %v178_v22  ;;  %v365_v24 = vpop.f32.mrb[3].mxu0  ;;  %v182_v25 = vmax.f32 %v176_v20, 0.0 }
 0x11f   :  { %v183_v26 = vmax.f32 %v179_v23, 0.0 }
 0x121   :  { %v186_v27 = vpack.c.bf16 %v183_v26, %v182_v25 }
 0x123   :  { %383 = vmatmul.mubr.bf16.vlgmr.msra.gmra.mrb[0].mxu1 %v186_v27 }
 0x1f6   :  { %v285_v29 = vpop.f32.mrb[0].mxu1 }
 0x1f7   :  { %v292_v30 = vadd.f32 %v309_v28, %v285_v29  ;;  %v384_v31 = vpop.f32.mrb[1].mxu1 }
 0x1f8   :  { %v288_v32 = vpop.f32.mrb[2].mxu1 }
 0x1f9   :  { %301 = vst [vmem:[%s537_s5] sm:$0xff] %v292_v30  ;;  %v293_v33 = vadd.f32 %v309_v28, %v288_v32  ;;  %v385_v34 = vpop.f32.mrb[3].mxu1 }
 0x1fb   :  { %302 = vst [vmem:[%s537_s5 + $0x8] sm:$0xff] %v293_v33 }
 0x1fc   :  { %307 = vsyncpa [#allocation4], 1 }
 0x1fd   :  { %308 = vsyncpa [#allocation6], 1 }

</bundles_post_ra>
